<compile_context>
chip_gen: v7x
topology: tpu7x:2x2x1
jax: 0.10.0
libtpu: 0.0.40
codegen_flags: <defaults>
</compile_context>

<pallas_src>
import jax
import jax.numpy as jnp
import numpy as np
from jax.experimental import pallas as pl
from jax.experimental.pallas import tpu as pltpu


def _round_up(x, m):
    return ((x + m - 1) // m) * m


def _scale_rows_kernel(x_ref, s_ref, o_ref):
    # x_ref: (tr, tc), s_ref: (tr, 1) float32, o_ref: (tr, tc)
    # Multiply in float32 (free for f32 inputs; closer to PyTorch's internal
    # scaling for bf16/fp16 inputs), then cast back to the output dtype.
    o_ref[...] = (x_ref[...].astype(jnp.float32) * s_ref[...]).astype(o_ref.dtype)


def _choose_tiles(rows, cols, itemsize, target_bytes=2 * 1024 * 1024):
    """Pick (tr, tc) so each x/out tile is ~1-4 MiB and the grid stays deep.

    Memory-bound f32 elementwise kernels hit ~85% of HBM roofline at 1-4 MiB
    blocks; bigger tiles only add VMEM pressure.  Total live footprint is
    2 buffers x double-buffered x (x tile + out tile + lane-padded scale tile)
    which stays well under the 32 MiB default scoped-VMEM limit.
    """
    assert cols % 128 == 0
    # Column tile: full width unless even an 8-row slab exceeds the target
    # (very large spatial planes, e.g. 512x512 f32 = 1 MiB/row).
    if 8 * cols * itemsize <= target_bytes:
        tc = cols
    else:
        tc = max(128, (target_bytes // (8 * itemsize) // 128) * 128)
    # Row tile within the per-buffer target, sublane (8) aligned.
    tr = max(8, (target_bytes // (tc * itemsize) // 8) * 8)
    # Cap so the row grid keeps ~8 steps: >=2 steps is required for megacore /
    # v7x's 2 TensorCores to shard, and depth keeps the DMA pipeline busy.
    tr = min(tr, max(8, _round_up(pl.cdiv(rows, 8), 8)))
    tr = min(tr, _round_up(rows, 8))
    return tr, tc


def dropout2d_scale(x_nchw, scale_nc, *, min_pallas_bytes=256 * 1024,
                    force_pallas=False, alias_input=False):
    """out[n, c, :, :] = x[n, c, :, :] * scale[n, c]  (per-channel-plane scale)."""
    n, c, h, w = x_nchw.shape
    rows, cols = n * c, h * w
    nbytes = x_nchw.size * x_nchw.dtype.itemsize

    # Fallbacks: (a) H*W not a multiple of 128 -> lane-dense stores impossible
    # without relayout (typical CNN maps: 7x7, 14x14, 28x28); (b) tiny tensors
    # where pallas_call launch overhead dominates.  XLA's fused broadcast
    # multiply is at/above parity there.
    scale_f32 = scale_nc.astype(jnp.float32)
    if (cols % 128 != 0) or (nbytes < min_pallas_bytes and not force_pallas):
        out = x_nchw.astype(jnp.float32) * scale_f32[:, :, None, None]
        return out.astype(x_nchw.dtype)

    # NCHW channel planes are contiguous -> (N*C, H*W) view is free: one HBM
    # read + one HBM write, lane axis = H*W (multiple of 128 -> dense vst).
    x2 = x_nchw.reshape(rows, cols)
    s2 = scale_f32.reshape(rows, 1)
    tr, tc = _choose_tiles(rows, cols, x2.dtype.itemsize)
    grid = (pl.cdiv(rows, tr), pl.cdiv(cols, tc))

    out = pl.pallas_call(
        _scale_rows_kernel,
        out_shape=jax.ShapeDtypeStruct((rows, cols), x2.dtype),
        grid_spec=pltpu.PrefetchScalarGridSpec(
            num_scalar_prefetch=0,
            grid=grid,
            in_specs=[
                pl.BlockSpec((tr, tc), lambda i, j: (i, j)),
                pl.BlockSpec((tr, 1), lambda i, j: (i, 0)),
            ],
            out_specs=pl.BlockSpec((tr, tc), lambda i, j: (i, j)),
        ),
        compiler_params=pltpu.CompilerParams(
            dimension_semantics=("parallel", "parallel"),
        ),
        # Reuse x's HBM buffer for the output when the caller donates x
        # (back-to-back MC-inference passes on large activations).
        input_output_aliases=({0: 0} if alias_input else {}),
    )(x2, s2)
    return out.reshape(n, c, h, w)


def mc_dropout(x, p=0.2, mc_inference=False, key=None, *,
               min_pallas_bytes=256 * 1024, force_pallas=False,
               alias_input=False):
    """Pallas equivalent of MCDropout.forward(x, mc_inference)."""
    if (not mc_inference) or p == 0.0:
        # F.dropout2d(training=False) is an exact no-op: return x untouched
        # (no kernel launch, no HBM traffic).
        return x
    if key is None:
        raise ValueError("mc_inference=True requires an explicit PRNG `key`.")
    n, c = x.shape[0], x.shape[1]
    # Channel-wise keep mask, scaled by 1/(1-p), matching F.dropout2d(training=True).
    keep = jax.random.bernoulli(key, 1.0 - p, (n, c))
    scale = keep.astype(jnp.float32) / jnp.float32(1.0 - p)
    return dropout2d_scale(x, scale, min_pallas_bytes=min_pallas_bytes,
                           force_pallas=force_pallas, alias_input=alias_input)


if __name__ == "__main__":
    key = jax.random.PRNGKey(0)
    kx, km, kn = jax.random.split(key, 3)

    N, C, H, W = 2, 4, 16, 16
    P = 0.2
    x = jax.random.normal(kx, (N, C, H, W), jnp.float32)

    # Path 1: mc_inference=False (the module's default call) -> exact identity,
    # short-circuited (no kernel launch).
    out_eval = jax.block_until_ready(mc_dropout(x, P, mc_inference=False))
    np.testing.assert_array_equal(np.asarray(out_eval), np.asarray(x))

    # Path 2: mc_inference=True -> channel-wise dropout2d with 1/(1-p) scaling.
    # force_pallas=True so the demo-sized input actually exercises the kernel
    # (default heuristics would route 8 KiB to the XLA fallback).
    out_mc = jax.block_until_ready(
        mc_dropout(x, P, mc_inference=True, key=km, force_pallas=True))
    keep_ref = jax.random.bernoulli(km, 1.0 - P, (N, C))
    scale_ref = keep_ref.astype(jnp.float32) / jnp.float32(1.0 - P)
    ref = x * scale_ref[:, :, None, None]
    np.testing.assert_allclose(np.asarray(out_mc), np.asarray(ref), rtol=0, atol=0)

    # Path 3: non-128-multiple spatial size (14x14) -> lane-density guard routes
    # to the fused XLA fallback; semantics must still match.
    x14 = jax.random.normal(kn, (N, C, 14, 14), jnp.float32)
    out14 = jax.block_until_ready(mc_dropout(x14, P, mc_inference=True, key=km))
    keep14 = jax.random.bernoulli(km, 1.0 - P, (N, C))
    ref14 = x14 * (keep14.astype(jnp.float32) / jnp.float32(1.0 - P))[:, :, None, None]
    np.testing.assert_allclose(np.asarray(out14), np.asarray(ref14), rtol=0, atol=0)

    print("KERNEL_OK")
</pallas_src>

<mosaic_0001>
module attributes {stable_mosaic.version = 11 : i64} {
  func.func @_scale_rows_kernel(%arg0: i32, %arg1: i32, %arg2: memref<8x256xf32, #tpu.memory_space<vmem>>, %arg3: memref<8x1xf32, #tpu.memory_space<vmem>>, %arg4: memref<8x256xf32, #tpu.memory_space<vmem>>) attributes {dimension_semantics = [#tpu.dimension_semantics<parallel>, #tpu.dimension_semantics<parallel>], iteration_bounds = array<i64: 1, 1>, scalar_prefetch = 0 : i64, scratch_operands = 0 : i64, tpu.core_type = #tpu.core_type<tc>, window_params = [{transform_indices = @transform_0, window_bounds = array<i64: 8, 256>}, {transform_indices = @transform_1, window_bounds = array<i64: 8, 1>}, {transform_indices = @transform_2, window_bounds = array<i64: 8, 256>}]} {
    %c0 = arith.constant 0 : index
    %c0_0 = arith.constant 0 : index
    %0 = vector.load %arg2[%c0, %c0_0] : memref<8x256xf32, #tpu.memory_space<vmem>>, vector<8x256xf32>
    %c0_1 = arith.constant 0 : index
    %c0_2 = arith.constant 0 : index
    %1 = vector.load %arg3[%c0_1, %c0_2] : memref<8x1xf32, #tpu.memory_space<vmem>>, vector<8x1xf32>
    %2 = vector.broadcast %1 : vector<8x1xf32> to vector<8x256xf32>
    %3 = arith.mulf %0, %2 : vector<8x256xf32>
    %c0_3 = arith.constant 0 : index
    %c0_4 = arith.constant 0 : index
    %4 = vector.load %arg4[%c0_3, %c0_4] : memref<8x256xf32, #tpu.memory_space<vmem>>, vector<8x256xf32>
    tpu.vector_store %arg4[%c0_3, %c0_4], %3 {strides = array<i32>} : memref<8x256xf32, #tpu.memory_space<vmem>>, vector<8x256xf32>,
    return
  }
  func.func @transform_0(%arg0: i32, %arg1: i32) -> (i32, i32) {
    %c0_i32 = arith.constant 0 : i32
    return %arg0, %arg1 : i32, i32
  }
  func.func @transform_1(%arg0: i32, %arg1: i32) -> (i32, i32) {
    %c0_i32 = arith.constant 0 : i32
    %c0_i32_0 = arith.constant 0 : i32
    return %arg0, %c0_i32 : i32, i32
  }
  func.func @transform_2(%arg0: i32, %arg1: i32) -> (i32, i32) {
    %c0_i32 = arith.constant 0 : i32
    return %arg0, %arg1 : i32, i32
  }
}

</mosaic_0001>

<bundles_post_ra>
// kernel: tpu_custom_call.1
= control target key start
LH: loop header
LB: loop body
LE: loop exit
PB: predicated region body
PF: predicated region fallthrough
CT: control target
= control target key end

     0   :  { %7 = vsyncpa [#allocation3], 0  ;;  %s148_s0 = inlined_call_operand.hbm [shape: f32[8,256], index: 0, kind: input, shape index: {}]   ;;  %s149_s1 = inlined_call_operand.vmem [shape: f32[8,1], index: 1, kind: input, shape index: {}]   ;;  %s150_s2 = inlined_call_operand.hbm [shape: f32[8,256], index: 2, kind: output, shape index: {}]  }
   0x1   :  { %8 = vsyncpa [#allocation4], 0  ;;  %s103_s9 = smov [#allocation2]   ;;  %s55_s13 = scalar_lea.hbm %s148_s0, 256 }
   0x2   :  { %s15_s10 = sshll.u32 %s103_s9, 4  ;;  %p56_p0 = scmp.ne.s32.totalorder %s148_s0, %s55_s13  ;;  %s16_s10 = int_to_ptr.vmem [resolvable:$true] %s15_s10 }
   0x3   :  { %p59_p1 = scmp.lt.u32.totalorder %s55_s13, %s148_s0 }
   0x5   :  { %p61_p2 = pnand %p59_p1, %p56_p0 }
   0x7   :  { %64 = shalt.err (!%p61_p2)
}
   0x8   :  { %s65_s18 = scalar_lea.vmem %s16_s10, 256  ;;  %p70_p4 = scmp.lt.s32.totalorder %s16_s10, %s16_s10 }
   0x9   :  { %p66_p3 = scmp.ne.s32.totalorder %s16_s10, %s65_s18  ;;  %p71_p5 = scmp.lt.s32.totalorder %s65_s18, %s65_s18 }
   0xb   :  { %p72_p6 = por %p71_p5, %p70_p4 }
   0xd   :  { %p73_p7 = pnand %p72_p6, %p66_p3 }
   0xf   :  { %76 = shalt.err (!%p73_p7)
}
  0x10   :  { %18 = dma.hbm_to_vmem [thread:$0]  %s148_s0, 256, %s16_s10, [#allocation3]  }
  0x11   :  { %99 = dma.done.wait [#allocation3], 256  }
  0x12   :  { %100 = vsyncadd [#allocation3], 4294967040  ;;  %v104_v0 = vmov 0   ;;  %v26_v1 = vld [vmem:[%s149_s1] sm:$0xff]  ;;  %v25_v3 = vld [vmem:[#allocation2 + $0x8] sm:$0xff]  ;;  %s105_s23 = smov [#allocation5]  }
  0x13   :  { %54 = vset.pattern.permute.xlu0 %v104_v0  ;;  %v24_v2 = vld [vmem:[#allocation2] sm:$0xff]  ;;  %s42_s24 = sshll.u32 %s105_s23, 4  ;;  %s43_s24 = int_to_ptr.vmem [resolvable:$true] %s42_s24 }
  0x14   :  { %29 = vperm.xlu0 %54, %v26_v1   ;;  %s77_s0 = scalar_lea.vmem %s43_s24, 256  ;;  %p82_p9 = scmp.lt.s32.totalorder %s43_s24, %s43_s24 }
  0x15   :  { %p78_p8 = scmp.ne.s32.totalorder %s43_s24, %s77_s0  ;;  %p83_p10 = scmp.lt.s32.totalorder %s77_s0, %s77_s0 }
  0x17   :  { %p84_p11 = por %p83_p10, %p82_p9 }
  0x19   :  { %p85_p12 = pnand %p84_p11, %p78_p8 }
  0x93   :  { %v30_v4 = vpop.permute.xlu0 %29 }
  0x94   :  { %v32_v5 = vmul.f32 %v30_v4, %v24_v2  ;;  %v33_v6 = vmul.f32 %v30_v4, %v25_v3 }
  0x96   :  { %34 = vst [vmem:[#allocation5] sm:$0xff] %v32_v5  ;;  %35 = vst [vmem:[#allocation5 + $0x8] sm:$0xff] %v33_v6 }
  0x97   :  { %88 = shalt.err (!%p85_p12)
}
  0x98   :  { %s89_s26 = scalar_lea.hbm %s150_s2, 256 }
  0x99   :  { %p90_p13 = scmp.ne.s32.totalorder %s150_s2, %s89_s26  ;;  %p93_p0 = scmp.lt.u32.totalorder %s89_s26, %s150_s2 }
  0x9b   :  { %p95_p1 = pnand %p93_p0, %p90_p13 }
  0x9d   :  { %98 = shalt.err (!%p95_p1)
}
  0x9e   :  { %45 = dma.vmem_to_hbm [thread:$0]  %s43_s24, 256, %s150_s2, [#allocation4]  }
  0x9f   :  { %101 = dma.done.wait [#allocation4], 256  }
  0xa0   :  { %102 = vsyncadd [#allocation4], 4294967040 }
  0xa1   :  { %49 = vsyncpa [#allocation3], 1 }
  0xa2   :  { %50 = vsyncpa [#allocation4], 1 }

</bundles_post_ra>
